<compile_context>
chip_gen: v5e
topology: v5e:2x2
jax: 0.10.0
libtpu: 0.0.40
codegen_flags: <defaults>
</compile_context>

<pallas_src>
import math

import jax
import jax.numpy as jnp
from jax import lax
from jax.experimental import pallas as pl
from jax.experimental.pallas import tpu as pltpu

H_REAL = 64          # true hidden width of local_proj
HP = 128             # hidden width padded to a full lane dim
INV_SQRT2 = 1.0 / math.sqrt(2.0)


def quality_feature_kernel(score_ref, w1_ref, b1_ref, g_ref, beta_ref,
                           wf_ref, out_ref):
    s = score_ref[...]                                            # (TB, 1) f32

    # Lane-index helpers (hoisted, computed once per grid step on a (1,128) vreg).
    lane = lax.broadcasted_iota(jnp.int32, (1, HP), 1).astype(jnp.float32)
    hid_mask = (lane < float(H_REAL)).astype(jnp.float32)         # 1 on real hidden lanes
    ones_col = (lane == float(H_REAL + 5)).astype(jnp.float32)    # bias column (lane 69)

    # ---- local_proj: Linear(1,64) -> LayerNorm(64) -> GELU, on 128 padded lanes ----
    # Padded lanes of w1/b1 are zero, so h == 0 there.
    h = s * w1_ref[...] + b1_ref[...]                             # (TB, 128)
    mu = jnp.sum(h, axis=-1, keepdims=True) * (1.0 / H_REAL)      # zeros don't bias the sum
    d = h - mu
    dm = d * hid_mask                                             # mask pad lanes out of var
    var = jnp.sum(dm * dm, axis=-1, keepdims=True) * (1.0 / H_REAL)
    hn = d * lax.rsqrt(var + 1e-5) * g_ref[...] + beta_ref[...]   # pad lanes -> 0 (gamma=beta=0)
    # torch nn.GELU() default: exact erf formulation; gelu(0) == 0 on pad lanes.
    act = 0.5 * hn * (1.0 + lax.erf(hn * INV_SQRT2))              # (TB, 128)

    # ---- piecewise-linear level weights, placed directly into lanes 64..68 ----
    # torch: lower_idx = max(0, min(3, int(score - 1))); alpha = score - (lower_idx + 1)
    lower = jnp.clip(jnp.floor(s - 1.0), 0.0, 3.0)                # (TB, 1)
    alpha = s - (lower + 1.0)                                     # (TB, 1)
    k_off = lane - float(H_REAL)                                  # lane 64..68 -> k 0..4
    lw = (jnp.where(k_off == lower, 1.0 - alpha, 0.0)
          + jnp.where(k_off == lower + 1.0, alpha, 0.0))          # (TB, 128), 0 elsewhere

    # ---- single fused MXU matmul: [act | lw | 1] @ [w2 ; emb ; b2] ----
    x = act + lw + ones_col                                       # disjoint lane ranges
    out = jnp.dot(x.astype(jnp.bfloat16), wf_ref[...],
                  preferred_element_type=jnp.float32)             # (TB, E) f32
    out_ref[...] = out.astype(out_ref.dtype)


def quality_feature_extractor(quality_score, params, *, max_tile=1024):
    """params = (emb, w1, b1, gamma, beta, w2, b2).

    Linear weights pre-transposed to (in, out): w1 (1,64), w2 (64,E).
    """
    emb, w1, b1, g, beta, w2, b2 = params
    E = emb.shape[1]
    score = quality_score.astype(jnp.float32).reshape(-1, 1)
    B = score.shape[0]

    # Batch tile: multiple of 8 sublanes; sized so the grid has >= 2 steps when
    # possible (lets dimension_semantics=("parallel",) use both v7x TCs).
    TB = min(max_tile, max(8, ((pl.cdiv(B, 2) + 7) // 8) * 8))
    grid = (pl.cdiv(B, TB),)

    # ---- parameter prep: pad hidden to 128 lanes, build fused (128, E) weight ----
    def pad_lanes(v):
        v = v.astype(jnp.float32).reshape(1, -1)
        return jnp.pad(v, ((0, 0), (0, HP - v.shape[1])))

    w1_p = pad_lanes(w1)          # (1, 128), zeros beyond lane 63
    b1_p = pad_lanes(b1)
    g_p = pad_lanes(g)            # padded gamma = 0  -> padded hn = 0
    beta_p = pad_lanes(beta)      # padded beta  = 0

    w_fused = jnp.zeros((HP, E), jnp.float32)
    w_fused = w_fused.at[:H_REAL, :].set(w2.astype(jnp.float32))          # rows 0..63
    w_fused = w_fused.at[H_REAL:H_REAL + 5, :].set(emb.astype(jnp.float32))  # rows 64..68
    w_fused = w_fused.at[H_REAL + 5, :].set(b2.astype(jnp.float32))       # row 69 (bias)
    w_fused = w_fused.astype(jnp.bfloat16)

    in_specs = [
        pl.BlockSpec((TB, 1), lambda i: (i, 0)),     # score tile
        pl.BlockSpec((1, HP), lambda i: (0, 0)),     # w1 (resident)
        pl.BlockSpec((1, HP), lambda i: (0, 0)),     # b1
        pl.BlockSpec((1, HP), lambda i: (0, 0)),     # LN gamma
        pl.BlockSpec((1, HP), lambda i: (0, 0)),     # LN beta
        pl.BlockSpec((HP, E), lambda i: (0, 0)),     # fused [w2; emb; b2] (bf16, resident)
    ]
    out_spec = pl.BlockSpec((TB, E), lambda i: (i, 0))

    return pl.pallas_call(
        quality_feature_kernel,
        out_shape=jax.ShapeDtypeStruct((B, E), jnp.float32),
        grid=grid,
        in_specs=in_specs,
        out_specs=out_spec,
        compiler_params=pltpu.CompilerParams(
            dimension_semantics=("parallel",),
            vmem_limit_bytes=32 << 20),
    )(score, w1_p, b1_p, g_p, beta_p, w_fused)


def init_params(key, embed_dim=256, hidden=H_REAL):
    """Deterministic synthetic parameters matching the module's shapes."""
    ks = jax.random.split(key, 5)
    emb = jax.random.normal(ks[0], (5, embed_dim), jnp.float32) * 0.02
    # Linear(1, 64): torch weight (64,1) -> transposed (1,64) here.
    w1 = jax.random.normal(ks[1], (1, hidden), jnp.float32)
    b1 = jax.random.normal(ks[2], (hidden,), jnp.float32) * 0.01
    g = jnp.ones((hidden,), jnp.float32)        # LayerNorm gamma
    beta = jnp.zeros((hidden,), jnp.float32)    # LayerNorm beta
    # Linear(64, embed_dim): torch weight (E,64) -> transposed (64,E) here.
    w2 = jax.random.normal(ks[3], (hidden, embed_dim), jnp.float32) / math.sqrt(hidden)
    b2 = jax.random.normal(ks[4], (embed_dim,), jnp.float32) * 0.01
    return emb, w1, b1, g, beta, w2, b2


def reference(quality_score, params):
    """Pure-JAX f32 reference of the torch module's forward pass."""
    emb, w1, b1, g, beta, w2, b2 = params
    s = quality_score.astype(jnp.float32).reshape(-1, 1)
    lower = jnp.clip(jnp.floor(s - 1.0), 0.0, 3.0)
    alpha = s - (lower + 1.0)
    idx = jnp.arange(5, dtype=jnp.float32)[None, :]
    lw = (jnp.where(idx == lower, 1.0 - alpha, 0.0)
          + jnp.where(idx == lower + 1.0, alpha, 0.0))
    q_emb = lw @ emb
    h = s * w1 + b1
    mu = jnp.mean(h, axis=-1, keepdims=True)
    var = jnp.mean((h - mu) ** 2, axis=-1, keepdims=True)
    hn = (h - mu) / jnp.sqrt(var + 1e-5) * g + beta
    act = 0.5 * hn * (1.0 + lax.erf(hn * INV_SQRT2))
    return q_emb + act @ w2 + b2


if __name__ == "__main__":
    B = 8
    EMBED_DIM = 256  # small stand-in for the default 768

    key = jax.random.PRNGKey(0)
    k_params, k_score = jax.random.split(key)
    params = init_params(k_params, embed_dim=EMBED_DIM)
    # Quality scores in [1, 5], shape (B, 1) — same convention as the module.
    quality_score = jax.random.uniform(k_score, (B, 1), jnp.float32,
                                       minval=1.0, maxval=5.0)

    out = quality_feature_extractor(quality_score, params)
    out = jax.block_until_ready(out)

    ref = reference(quality_score, params)
    assert out.shape == (B, EMBED_DIM)
    # Tolerance relaxed: the fused (TB,128)@(128,E) matmul uses bf16 MXU operands.
    assert jnp.allclose(out, ref, atol=2e-2, rtol=2e-2), "mismatch vs reference"

    print("KERNEL_OK")
</pallas_src>

<mosaic_0001>
module attributes {stable_mosaic.version = 11 : i64} {
  func.func @quality_feature_kernel(%arg0: i32, %arg1: memref<8x1xf32, #tpu.memory_space<vmem>>, %arg2: memref<1x128xf32, #tpu.memory_space<vmem>>, %arg3: memref<1x128xf32, #tpu.memory_space<vmem>>, %arg4: memref<1x128xf32, #tpu.memory_space<vmem>>, %arg5: memref<1x128xf32, #tpu.memory_space<vmem>>, %arg6: memref<128x256xbf16, #tpu.memory_space<vmem>>, %arg7: memref<8x256xf32, #tpu.memory_space<vmem>>) attributes {dimension_semantics = [#tpu.dimension_semantics<parallel>], iteration_bounds = array<i64: 1>, scalar_prefetch = 0 : i64, scratch_operands = 0 : i64, tpu.core_type = #tpu.core_type<tc>, window_params = [{transform_indices = @transform_0, window_bounds = array<i64: 8, 1>}, {pipeline_mode = #tpu.pipeline_mode<synchronous>, transform_indices = @transform_1, window_bounds = array<i64: 1, 128>}, {pipeline_mode = #tpu.pipeline_mode<synchronous>, transform_indices = @transform_2, window_bounds = array<i64: 1, 128>}, {pipeline_mode = #tpu.pipeline_mode<synchronous>, transform_indices = @transform_3, window_bounds = array<i64: 1, 128>}, {pipeline_mode = #tpu.pipeline_mode<synchronous>, transform_indices = @transform_4, window_bounds = array<i64: 1, 128>}, {pipeline_mode = #tpu.pipeline_mode<synchronous>, transform_indices = @transform_5, window_bounds = array<i64: 128, 256>}, {transform_indices = @transform_6, window_bounds = array<i64: 8, 256>}]} {
    %c0 = arith.constant 0 : index
    %c0_0 = arith.constant 0 : index
    %0 = vector.load %arg1[%c0, %c0_0] : memref<8x1xf32, #tpu.memory_space<vmem>>, vector<8x1xf32>
    %1 = tpu.iota {dimensions = array<i32: 1>} : vector<1x128xi32>
    %2 = arith.sitofp %1 : vector<1x128xi32> to vector<1x128xf32>
    %cst = arith.constant 6.400000e+01 : f32
    %3 = vector.broadcast %cst : f32 to vector<1x128xf32>
    %4 = arith.cmpf olt, %2, %3 : vector<1x128xf32>
    %5 = arith.extui %4 : vector<1x128xi1> to vector<1x128xi32>
    %6 = arith.sitofp %5 : vector<1x128xi32> to vector<1x128xf32>
    %cst_1 = arith.constant 6.900000e+01 : f32
    %7 = vector.broadcast %cst_1 : f32 to vector<1x128xf32>
    %8 = arith.cmpf oeq, %2, %7 : vector<1x128xf32>
    %9 = arith.extui %8 : vector<1x128xi1> to vector<1x128xi32>
    %10 = arith.sitofp %9 : vector<1x128xi32> to vector<1x128xf32>
    %c0_2 = arith.constant 0 : index
    %c0_3 = arith.constant 0 : index
    %11 = vector.load %arg2[%c0_2, %c0_3] : memref<1x128xf32, #tpu.memory_space<vmem>>, vector<1x128xf32>
    %12 = vector.broadcast %0 : vector<8x1xf32> to vector<8x128xf32>
    %13 = vector.broadcast %11 : vector<1x128xf32> to vector<8x128xf32>
    %14 = arith.mulf %12, %13 : vector<8x128xf32>
    %c0_4 = arith.constant 0 : index
    %c0_5 = arith.constant 0 : index
    %15 = vector.load %arg3[%c0_4, %c0_5] : memref<1x128xf32, #tpu.memory_space<vmem>>, vector<1x128xf32>
    %16 = vector.broadcast %15 : vector<1x128xf32> to vector<8x128xf32>
    %17 = arith.addf %14, %16 : vector<8x128xf32>
    %cst_6 = arith.constant dense<0.000000e+00> : vector<8xf32>
    %18 = vector.multi_reduction <add>, %17, %cst_6 [1] : vector<8x128xf32> to vector<8xf32>
    %19 = vector.shape_cast %18 : vector<8xf32> to vector<8x1xf32>
    %cst_7 = arith.constant 1.562500e-02 : f32
    %20 = vector.broadcast %cst_7 : f32 to vector<8x1xf32>
    %21 = arith.mulf %19, %20 : vector<8x1xf32>
    %22 = vector.broadcast %21 : vector<8x1xf32> to vector<8x128xf32>
    %23 = arith.subf %17, %22 : vector<8x128xf32>
    %24 = vector.broadcast %6 : vector<1x128xf32> to vector<8x128xf32>
    %25 = arith.mulf %23, %24 : vector<8x128xf32>
    %26 = arith.mulf %25, %25 : vector<8x128xf32>
    %cst_8 = arith.constant dense<0.000000e+00> : vector<8xf32>
    %27 = vector.multi_reduction <add>, %26, %cst_8 [1] : vector<8x128xf32> to vector<8xf32>
    %28 = vector.shape_cast %27 : vector<8xf32> to vector<8x1xf32>
    %cst_9 = arith.constant 1.562500e-02 : f32
    %29 = vector.broadcast %cst_9 : f32 to vector<8x1xf32>
    %30 = arith.mulf %28, %29 : vector<8x1xf32>
    %cst_10 = arith.constant 9.99999974E-6 : f32
    %31 = vector.broadcast %cst_10 : f32 to vector<8x1xf32>
    %32 = arith.addf %30, %31 : vector<8x1xf32>
    %33 = math.rsqrt %32 : vector<8x1xf32>
    %34 = vector.broadcast %33 : vector<8x1xf32> to vector<8x128xf32>
    %35 = arith.mulf %23, %34 : vector<8x128xf32>
    %c0_11 = arith.constant 0 : index
    %c0_12 = arith.constant 0 : index
    %36 = vector.load %arg4[%c0_11, %c0_12] : memref<1x128xf32, #tpu.memory_space<vmem>>, vector<1x128xf32>
    %37 = vector.broadcast %36 : vector<1x128xf32> to vector<8x128xf32>
    %38 = arith.mulf %35, %37 : vector<8x128xf32>
    %c0_13 = arith.constant 0 : index
    %c0_14 = arith.constant 0 : index
    %39 = vector.load %arg5[%c0_13, %c0_14] : memref<1x128xf32, #tpu.memory_space<vmem>>, vector<1x128xf32>
    %40 = vector.broadcast %39 : vector<1x128xf32> to vector<8x128xf32>
    %41 = arith.addf %38, %40 : vector<8x128xf32>
    %cst_15 = arith.constant 5.000000e-01 : f32
    %42 = vector.broadcast %cst_15 : f32 to vector<8x128xf32>
    %43 = arith.mulf %42, %41 : vector<8x128xf32>
    %cst_16 = arith.constant 0.707106769 : f32
    %44 = vector.broadcast %cst_16 : f32 to vector<8x128xf32>
    %45 = arith.mulf %41, %44 : vector<8x128xf32>
    %46 = math.erf %45 : vector<8x128xf32>
    %cst_17 = arith.constant 1.000000e+00 : f32
    %47 = vector.broadcast %cst_17 : f32 to vector<8x128xf32>
    %48 = arith.addf %47, %46 : vector<8x128xf32>
    %49 = arith.mulf %43, %48 : vector<8x128xf32>
    %cst_18 = arith.constant 1.000000e+00 : f32
    %50 = vector.broadcast %cst_18 : f32 to vector<8x1xf32>
    %51 = arith.subf %0, %50 : vector<8x1xf32>
    %52 = math.floor %51 : vector<8x1xf32>
    %cst_19 = arith.constant 0.000000e+00 : f32
    %cst_20 = arith.constant 3.000000e+00 : f32
    %53 = vector.broadcast %cst_19 : f32 to vector<8x1xf32>
    %54 = arith.maximumf %53, %52 : vector<8x1xf32>
    %55 = vector.broadcast %cst_20 : f32 to vector<8x1xf32>
    %56 = arith.minimumf %55, %54 : vector<8x1xf32>
    %cst_21 = arith.constant 1.000000e+00 : f32
    %57 = vector.broadcast %cst_21 : f32 to vector<8x1xf32>
    %58 = arith.addf %56, %57 : vector<8x1xf32>
    %59 = arith.subf %0, %58 : vector<8x1xf32>
    %cst_22 = arith.constant 6.400000e+01 : f32
    %60 = vector.broadcast %cst_22 : f32 to vector<1x128xf32>
    %61 = arith.subf %2, %60 : vector<1x128xf32>
    %62 = vector.broadcast %61 : vector<1x128xf32> to vector<8x128xf32>
    %63 = vector.broadcast %56 : vector<8x1xf32> to vector<8x128xf32>
    %64 = arith.cmpf oeq, %62, %63 : vector<8x128xf32>
    %cst_23 = arith.constant 1.000000e+00 : f32
    %65 = vector.broadcast %cst_23 : f32 to vector<8x1xf32>
    %66 = arith.subf %65, %59 : vector<8x1xf32>
    %cst_24 = arith.constant 0.000000e+00 : f32
    %67 = vector.shape_cast %66 : vector<8x1xf32> to vector<8x1xf32>
    %68 = vector.broadcast %67 : vector<8x1xf32> to vector<8x128xf32>
    %69 = vector.broadcast %cst_24 : f32 to vector<8x128xf32>
    %70 = arith.select %64, %68, %69 : vector<8x128xi1>, vector<8x128xf32>
    %cst_25 = arith.constant 1.000000e+00 : f32
    %71 = vector.broadcast %cst_25 : f32 to vector<8x1xf32>
    %72 = arith.addf %56, %71 : vector<8x1xf32>
    %73 = vector.broadcast %61 : vector<1x128xf32> to vector<8x128xf32>
    %74 = vector.broadcast %72 : vector<8x1xf32> to vector<8x128xf32>
    %75 = arith.cmpf oeq, %73, %74 : vector<8x128xf32>
    %cst_26 = arith.constant 0.000000e+00 : f32
    %76 = vector.shape_cast %59 : vector<8x1xf32> to vector<8x1xf32>
    %77 = vector.broadcast %76 : vector<8x1xf32> to vector<8x128xf32>
    %78 = vector.broadcast %cst_26 : f32 to vector<8x128xf32>
    %79 = arith.select %75, %77, %78 : vector<8x128xi1>, vector<8x128xf32>
    %80 = arith.addf %70, %79 : vector<8x128xf32>
    %81 = arith.addf %49, %80 : vector<8x128xf32>
    %82 = vector.broadcast %10 : vector<1x128xf32> to vector<8x128xf32>
    %83 = arith.addf %81, %82 : vector<8x128xf32>
    %84 = arith.truncf %83 : vector<8x128xf32> to vector<8x128xbf16>
    %c0_27 = arith.constant 0 : index
    %c0_28 = arith.constant 0 : index
    %85 = vector.load %arg6[%c0_27, %c0_28] : memref<128x256xbf16, #tpu.memory_space<vmem>>, vector<128x256xbf16>
    %cst_29 = arith.constant dense<0.000000e+00> : vector<8x256xf32>
    %86 = tpu.matmul %84, %85, %cst_29 {dimension_numbers = #tpu.dot_dimension_numbers<[1], [0], [0], [1], [0, 0, 1, 1], [], []>} : vector<8x128xbf16>, vector<128x256xbf16>, vector<8x256xf32> -> vector<8x256xf32>
    %c0_30 = arith.constant 0 : index
    %c0_31 = arith.constant 0 : index
    %87 = vector.load %arg7[%c0_30, %c0_31] : memref<8x256xf32, #tpu.memory_space<vmem>>, vector<8x256xf32>
    tpu.vector_store %arg7[%c0_30, %c0_31], %86 {strides = array<i32>} : memref<8x256xf32, #tpu.memory_space<vmem>>, vector<8x256xf32>,
    return
  }
  func.func @transform_0(%arg0: i32) -> (i32, i32) {
    %c0_i32 = arith.constant 0 : i32
    %c0_i32_0 = arith.constant 0 : i32
    return %arg0, %c0_i32 : i32, i32
  }
  func.func @transform_1(%arg0: i32) -> (i32, i32) {
    %c0_i32 = arith.constant 0 : i32
    %c0_i32_0 = arith.constant 0 : i32
    %c0_i32_1 = arith.constant 0 : i32
    return %c0_i32, %c0_i32_0 : i32, i32
  }
  func.func @transform_2(%arg0: i32) -> (i32, i32) {
    %c0_i32 = arith.constant 0 : i32
    %c0_i32_0 = arith.constant 0 : i32
    %c0_i32_1 = arith.constant 0 : i32
    return %c0_i32, %c0_i32_0 : i32, i32
  }
  func.func @transform_3(%arg0: i32) -> (i32, i32) {
    %c0_i32 = arith.constant 0 : i32
    %c0_i32_0 = arith.constant 0 : i32
    %c0_i32_1 = arith.constant 0 : i32
    return %c0_i32, %c0_i32_0 : i32, i32
  }
  func.func @transform_4(%arg0: i32) -> (i32, i32) {
    %c0_i32 = arith.constant 0 : i32
    %c0_i32_0 = arith.constant 0 : i32
    %c0_i32_1 = arith.constant 0 : i32
    return %c0_i32, %c0_i32_0 : i32, i32
  }
  func.func @transform_5(%arg0: i32) -> (i32, i32) {
    %c0_i32 = arith.constant 0 : i32
    %c0_i32_0 = arith.constant 0 : i32
    %c0_i32_1 = arith.constant 0 : i32
    return %c0_i32, %c0_i32_0 : i32, i32
  }
  func.func @transform_6(%arg0: i32) -> (i32, i32) {
    %c0_i32 = arith.constant 0 : i32
    %c0_i32_0 = arith.constant 0 : i32
    return %arg0, %c0_i32 : i32, i32
  }
}

</mosaic_0001>

<bundles_post_ra>
// kernel: tpu_custom_call.1
= control target key start
LH: loop header
LB: loop body
LE: loop exit
PB: predicated region body
PF: predicated region fallthrough
CT: control target
= control target key end

     0   :  { %11 = vsyncpa [#allocation3], 0  ;;  %s561_s0 = inlined_call_operand.vmem [shape: f32[8,1], index: 0, kind: input, shape index: {}]   ;;  %s562_s1 = inlined_call_operand.vmem [shape: f32[1,128], index: 1, kind: input, shape index: {}]   ;;  %s563_s2 = inlined_call_operand.vmem [shape: f32[1,128], index: 2, kind: input, shape index: {}]   ;;  %s564_s3 = inlined_call_operand.vmem [shape: f32[1,128], index: 3, kind: input, shape index: {}]   ;;  %s565_s4 = inlined_call_operand.vmem [shape: f32[1,128], index: 4, kind: input, shape index: {}]   ;;  %s566_s5 = inlined_call_operand.hbm [shape: bf16[128,256], index: 5, kind: input, shape index: {}]   ;;  %s567_s6 = inlined_call_operand.hbm [shape: f32[8,256], index: 6, kind: output, shape index: {}]  }
   0x1   :  { %12 = vsyncpa [#allocation4], 0  ;;  %s27_s23 = sshll.u32 %s566_s5, 4  ;;  %s471_s24 = smov [#allocation2]   ;;  %s28_s23 = int_to_ptr.hbm [resolvable:$true] %s27_s23 }
   0x2   :  { %s29_s25 = sshll.u32 %s471_s24, 4  ;;  %s472_s26 = smov 128   ;;  %s30_s25 = int_to_ptr.vmem [resolvable:$true] %s29_s25 }
   0x3   :  { %s473_s27 = smov 8  }
   0x4   :  { %35 = dma.hbm_to_vmem [thread:$0]  %s28_s23, 2048, %s30_s25, [#allocation3], %s472_s26, %s472_s26, %s473_s27  }
   0x5   :  { %467 = dma.done.wait [#allocation3], 2048  }
   0x6   :  { %468 = vsyncadd [#allocation3], 4294965248  ;;  %v474_v0 = vmov 0   ;;  %v40_v1 = vld [vmem:[%s561_s0] sm:$0xff]  ;;  %v41_v7 = vlaneseq  ;;  %v475_v16 = vmov 0.0   ;;  %s307_s12 = sshll.u32 %s567_s6, 4  ;;  %s308_s12 = int_to_ptr.hbm [resolvable:$true] %s307_s12 }
   0x7   :  { %408 = vset.pattern.permute.xlu0 %v474_v0  ;;  %409 = vset.pattern.permute.xlu1 %v474_v0  ;;  %v411_v2 = vld [vmem:[%s562_s1] ss:$0 sm:$0xff]  ;;  %v320_v8 = vadd.f32 -1.0, %v40_v1  ;;  %v380_v24 = vld [vmem:[#allocation2 + $0x70] sm:$0xf] }
   0x8   :  { %410 = vset.pattern.permute.xlu2 %v474_v0  ;;  %53 = vperm.xlu0 %408, %v40_v1   ;;  %v412_v3 = vld [vmem:[%s563_s2] ss:$0 sm:$0xff]  ;;  %v42_v9 = vand.u32 127, %v41_v7  ;;  %v401_v25 = vld [vmem:[#allocation2 + $0x74] sm:$0xf0] }
   0x9   :  { %v141_v10 = vfloor.f32 %v320_v8  ;;  %v381_v26 = vor.u32 %v401_v25, %v380_v24  ;;  %v400_v27 = vld [vmem:[#allocation2 + $0x74] sm:$0xf]  ;;  %v382_v28 = vld [vmem:[#allocation2 + $0x78] sm:$0xf0]  ;;  %v372_v29 = vld [vmem:[#allocation2 + $0x60] sm:$0xf] }
   0xa   :  { %v524_v11 = vcvt.s32.f32 %v42_v9  ;;  %v385_v30 = vor.u32 %v400_v27, %v382_v28  ;;  %v399_v31 = vld [vmem:[#allocation2 + $0x64] sm:$0xf0]  ;;  %v398_v32 = vld [vmem:[#allocation2 + $0x64] sm:$0xf]  ;;  %v374_v33 = vld [vmem:[#allocation2 + $0x68] sm:$0xf0] }
   0xb   :  { %v142_v12 = vmax.f32 %v141_v10, 0.0  ;;  %272 = vmatpush.bf16.msra.mxu0 %v381_v26  ;;  %v373_v34 = vor.u32 %v399_v31, %v372_v29  ;;  %v377_v35 = vor.u32 %v398_v32, %v374_v33  ;;  %v413_v45 = vld [vmem:[%s564_s3] ss:$0 sm:$0xff]  ;;  %v364_v52 = vld [vmem:[#allocation2 + $0x50] sm:$0xf]  ;;  %s476_s3 = smov [#allocation5]  }
   0xc   :  { %vm44_vm0 = vcmp.lt.f32.partialorder %v524_v11, 64.0  ;;  %285 = vmatpush.bf16.msra.mxu1 %v385_v30  ;;  %v414_v48 = vld [vmem:[%s565_s4] ss:$0 sm:$0xff]  ;;  %v397_v53 = vld [vmem:[#allocation2 + $0x54] sm:$0xf0]  ;;  %vm47_vm10 = vcmp.eq.f32.partialorder %v524_v11, 69.0 }
   0xd   :  { %v143_v14 = vmin.f32 %v142_v12, 3.0  ;;  %v317_v17 = vsel %vm44_vm0, 1.0, %v475_v16  ;;  %v396_v54 = vld [vmem:[#allocation2 + $0x54] sm:$0xf]  ;;  %v365_v56 = vor.u32 %v397_v53, %v364_v52  ;;  %v366_v57 = vld [vmem:[#allocation2 + $0x58] sm:$0xf0] }
   0xe   :  { %v369_v58 = vor.u32 %v396_v54, %v366_v57  ;;  %v356_v60 = vld [vmem:[#allocation2 + $0x40] sm:$0xf]  ;;  %v395_v61 = vld [vmem:[#allocation2 + $0x44] sm:$0xf0]  ;;  %v394_v63 = vld [vmem:[#allocation2 + $0x44] sm:$0xf] }
   0xf   :  { %v144_v18 = vadd.f32 1.0, %v143_v14  ;;  %273 = vmatpush.bf16.msra.mxu0 %v373_v34  ;;  %v357_v62 = vor.u32 %v395_v61, %v356_v60  ;;  %v358_v0 = vld [vmem:[#allocation2 + $0x48] sm:$0xf0]  ;;  %v393_v7 = vld [vmem:[#allocation2 + $0x34] sm:$0xf0]  ;;  %s305_s4 = sshll.u32 %s476_s3, 4  ;;  %s306_s4 = int_to_ptr.vmem [resolvable:$true] %s305_s4 }
  0x10   :  { %286 = vmatpush.bf16.msra.mxu1 %v377_v35  ;;  %v392_v8 = vld [vmem:[#allocation2 + $0x34] sm:$0xf]  ;;  %v350_v9 = vld [vmem:[#allocation2 + $0x38] sm:$0xf0]  ;;  %v332_v26 = vld [vmem:[#allocation2 + $0x10] sm:$0xf] }
  0x11   :  { %162 = vperm.xlu2 %410, %v144_v18   ;;  %v145_v20 = vsub.f32 %v40_v1, %v144_v18  ;;  %v340_v18 = vld [vmem:[#allocation2 + $0x20] sm:$0xf]  ;;  %v389_v28 = vld [vmem:[#allocation2 + $0x14] sm:$0xf0]  ;;  %v388_v29 = vld [vmem:[#allocation2 + $0x14] sm:$0xf] }
  0x12   :  { %v334_v30 = vld [vmem:[#allocation2 + $0x18] sm:$0xf0]  ;;  %v333_v32 = vor.u32 %v389_v28, %v332_v26  ;;  %v324_v34 = vld [vmem:[#allocation2] sm:$0xf]  ;;  %v387_v35 = vld [vmem:[#allocation2 + $0x4] sm:$0xf0] }
  0x13   :  { %v153_v23 = vsub.f32 1.0, %v145_v20  ;;  %274 = vmatpush.bf16.msra.mxu0 %v365_v56  ;;  %v337_v33 = vor.u32 %v388_v29, %v334_v30 }
  0x14   :  { %287 = vmatpush.bf16.msra.mxu1 %v369_v58  ;;  %v321_v58 = vadd.f32 -64.0, %v524_v11 }
  0x17   :  { %275 = vmatpush.bf16.msra.mxu0 %v357_v62 }
  0x19   :  { %156 = vperm.xlu2 %410, %v153_v23  }
  0x21   :  { %168 = vperm.xlu2 %410, %v145_v20   ;;  %v390_v20 = vld [vmem:[#allocation2 + $0x24] sm:$0xf] }
  0x7a   :  { %v54_v4 = vpop.permute.xlu0 %53 }
  0x7b   :  { %v59_v5 = vmul.f32 %v411_v2, %v54_v4 }
  0x7d   :  { %v64_v6 = vadd.f32 %v412_v3, %v59_v5  ;;  %v361_v3 = vor.u32 %v394_v63, %v358_v0 }
  0x7f   :  { %65 = vadd.xlane.f32.xlu0 %v64_v6  ;;  %288 = vmatpush.bf16.msra.mxu1 %v361_v3 }
  0xf2   :  { %v66_v13 = vpop.xlane.xlu0 %65 }
  0xf3   :  { %v67_v15 = vmul.f32 0.015625, %v66_v13 }
  0xf5   :  { %v68_v19 = vsub.f32 %v64_v6, %v67_v15  ;;  %v348_v6 = vld [vmem:[#allocation2 + $0x30] sm:$0xf] }
  0xf6   :  { %v349_v13 = vor.u32 %v393_v7, %v348_v6 }
  0xf7   :  { %v69_v21 = vmul.f32 %v317_v17, %v68_v19 }
  0xf8   :  { %276 = vmatpush.bf16.msra.mxu0 %v349_v13 }
  0xf9   :  { %v70_v22 = vmul.f32 %v69_v21, %v69_v21  ;;  %v342_v21 = vld [vmem:[#allocation2 + $0x28] sm:$0xf0] }
  0xfa   :  { %v345_v24 = vor.u32 %v390_v20, %v342_v21 }
  0xfb   :  { %71 = vadd.xlane.f32.xlu1 %v70_v22 }
 0x114   :  { %149 = vperm.xlu1 %409, %v143_v14   ;;  %v353_v14 = vor.u32 %v392_v8, %v350_v9 }
 0x116   :  { %289 = vmatpush.bf16.msra.mxu1 %v353_v14 }
 0x11a   :  { %290 = vmatpush.bf16.msra.mxu1 %v345_v24 }
 0x11e   :  { %291 = vmatpush.bf16.msra.mxu1 %v337_v33 }
 0x16e   :  { %v72_v36 = vpop.xlane.xlu1 %71 }
 0x16f   :  { %v73_v37 = vmul.f32 0.015625, %v72_v36  ;;  %v386_v36 = vld [vmem:[#allocation2 + $0x4] sm:$0xf] }
 0x171   :  { %v74_v38 = vadd.f32 1e-05, %v73_v37 }
 0x173   :  { %415 = vrsqrt.f32 %v74_v38  ;;  %vm81_vm2 = vweird.f32 %v74_v38 }
 0x179   :  { %v416_v39 = vpop.eup %415 }
 0x17a   :  { %v76_v40 = vmul.f32 %v416_v39, %v74_v38  ;;  %vm82_vm1 = vweird.f32 %v416_v39  ;;  %v325_v38 = vor.u32 %v387_v35, %v324_v34 }
 0x17b   :  { %vm83_vm3 = vmor %vm81_vm2, %vm82_vm1 }
 0x17c   :  { %v77_v41 = vmul.f32 %v416_v39, %v76_v40 }
 0x17e   :  { %v78_v42 = vmul.f32 0.5, %v77_v41 }
 0x180   :  { %v79_v43 = vsub.f32 1.5, %v78_v42 }
 0x182   :  { %v80_v44 = vmul.f32 %v416_v39, %v79_v43  ;;  %v163_v43 = vpop.permute.xlu2 %162 }
 0x183   :  { %vm165_vm8 = vcmp.eq.f32.partialorder %v321_v58, %v163_v43 }
 0x184   :  { %v84_v46 = vsel %vm83_vm3, %v416_v39, %v80_v44  ;;  %v326_v39 = vld [vmem:[#allocation2 + $0x8] sm:$0xf0] }
 0x185   :  { %v85_v47 = vmul.f32 %v84_v46, %v68_v19  ;;  %v391_v19 = vld [vmem:[#allocation2 + $0x24] sm:$0xf0]  ;;  %v329_v41 = vor.u32 %v386_v36, %v326_v39 }
 0x186   :  { %v341_v23 = vor.u32 %v391_v19, %v340_v18  ;;  %v150_v61 = vpop.permute.xlu1 %149 }
 0x187   :  { %v90_v49 = vmul.f32 %v413_v45, %v85_v47  ;;  %292 = vmatpush.bf16.msra.mxu1 %v329_v41  ;;  %vm152_vm9 = vcmp.eq.f32.partialorder %v321_v58, %v150_v61 }
 0x188   :  { %277 = vmatpush.bf16.msra.mxu0 %v341_v23 }
 0x189   :  { %v534_v50 = vadd.f32 %v414_v48, %v90_v49 }
 0x18a   :  { %v157_v48 = vpop.permute.xlu2 %156 }
 0x18b   :  { %v537_v51 = vmul.f32 0.70710677, %v534_v50  ;;  %v96_v6 = vmul.f32 0.5, %v534_v50 }
 0x18c   :  { %278 = vmatpush.bf16.msra.mxu0 %v333_v32 }
 0x18d   :  { %v98_v55 = vmul.f32 %v537_v51, %v537_v51 }
 0x18f   :  { %v541_v59 = vmin.f32 %v98_v55, 16.0 }
 0x190   :  { %279 = vmatpush.bf16.msra.mxu0 %v325_v38 }
 0x191   :  { %v100_v1 = vmul.f32 2.1237322e-06, %v541_v59  ;;  %v111_v2 = vmul.f32 3.8918573e-05, %v541_v59 }
 0x193   :  { %v101_v4 = vadd.f32 0.00028619796, %v100_v1  ;;  %v112_v5 = vadd.f32 0.001143296, %v111_v2  ;;  %v169_v2 = vpop.permute.xlu2 %168 }
 0x195   :  { %v102_v10 = vmul.f32 %v101_v4, %v541_v59  ;;  %v113_v12 = vmul.f32 %v112_v5, %v541_v59  ;;  %v159_v4 = vsel %vm152_vm9, %v157_v48, 0.0  ;;  %v171_v5 = vsel %vm165_vm8, %v169_v2, 0.0 }
 0x196   :  { %v172_v9 = vadd.f32 %v171_v5, %v159_v4 }
 0x197   :  { %v103_v15 = vadd.f32 0.0036580483, %v102_v10  ;;  %v114_v17 = vadd.f32 0.014752088, %v113_v12  ;;  %v318_v10 = vsel %vm47_vm10, 1.0, %v475_v16 }
 0x199   :  { %v115_v22 = vmul.f32 %v114_v17, %v541_v59  ;;  %v104_v27 = vmul.f32 %v103_v15, %v541_v59 }
 0x19b   :  { %v116_v25 = vadd.f32 0.112945676, %v115_v22  ;;  %v105_v40 = vadd.f32 0.05243302, %v104_v27 }
 0x19d   :  { %v117_v31 = vmul.f32 %v116_v25, %v541_v59  ;;  %v106_v45 = vmul.f32 %v105_v40, %v541_v59 }
 0x19f   :  { %v118_v37 = vadd.f32 0.4994258, %v117_v31  ;;  %v107_v46 = vadd.f32 0.18741608, %v106_v45 }
 0x1a1   :  { %v119_v42 = vmul.f32 %v118_v37, %v541_v59  ;;  %v108_v49 = vmul.f32 %v107_v46, %v541_v59 }
 0x1a3   :  { %v120_v44 = vadd.f32 1.0, %v119_v42  ;;  %v109_v55 = vadd.f32 1.1283791, %v108_v49 }
 0x1a5   :  { %417 = vrcp.f32 %v120_v44  ;;  %v132_v54 = vand.u32 2147483648, %v120_v44  ;;  %v130_v57 = vand.u32 2147483647, %v120_v44  ;;  %vm126_vm5 = vweird.f32 %v120_v44 }
 0x1a6   :  { %v110_v63 = vmul.f32 %v109_v55, %v537_v51 }
 0x1a7   :  { %v133_v62 = vor.u32 1.1754944e-38, %v132_v54  ;;  %vm131_vm7 = vcmp.eq.f32.partialorder %v130_v57, 8.507059e+37 }
 0x1ab   :  { %v418_v47 = vpop.eup %417 }
 0x1ac   :  { %v122_v52 = vmul.f32 %v418_v47, %v120_v44  ;;  %vm127_vm4 = vweird.f32 %v418_v47 }
 0x1ad   :  { %vm128_vm6 = vmor %vm126_vm5, %vm127_vm4 }
 0x1ae   :  { %v123_v53 = vsub.f32 1.0, %v122_v52 }
 0x1b0   :  { %v124_v56 = vmul.f32 %v418_v47, %v123_v53 }
 0x1b2   :  { %v125_v60 = vadd.f32 %v418_v47, %v124_v56 }
 0x1b4   :  { %v129_v0 = vsel %vm128_vm6, %v418_v47, %v125_v60 }
 0x1b5   :  { %v134_v1 = vsel %vm131_vm7, %v133_v62, %v129_v0 }
 0x1b6   :  { %v135_v59 = vmul.f32 %v134_v1, %v110_v63 }
 0x1b8   :  { %v319_v3 = vclamps-f32 %v135_v59, 1.0 }
 0x1ba   :  { %v138_v7 = vadd.f32 1.0, %v319_v3 }
 0x1bc   :  { %v139_v8 = vmul.f32 %v138_v7, %v96_v6 }
 0x1be   :  { %v173_v51 = vadd.f32 %v172_v9, %v139_v8 }
 0x1c0   :  { %v174_v12 = vadd.f32 %v318_v10, %v173_v51 }
 0x1c2   :  { %v175_v13 = vpack.c.bf16 %v174_v12, %v174_v12 }
 0x1c4   :  { %280 = vmatmul.bf16.vlgmr.msra.gmra.mxu0 %v175_v13  ;;  %293 = vmatmul.bf16.vlgmr.msra.gmra.mxu1 %v175_v13 }
 0x241   :  { %v281_v14 = vpop.f32.mrf.mxu0  ;;  %v294_v50 = vpop.f32.mrf.mxu1 }
 0x242   :  { %298 = vst [vmem:[#allocation5] sm:$0xff] %v281_v14 }
 0x243   :  { %299 = vst [vmem:[#allocation5 + $0x8] sm:$0xff] %v294_v50 }
 0x244   :  { %310 = dma.vmem_to_hbm [thread:$0]  %s306_s4, 256, %s308_s12, [#allocation4]  }
 0x249   :  { %v283_v11 = vpop.f32.mrf.mxu0  ;;  %v296_v16 = vpop.f32.mrf.mxu1 }
 0x24a   :  { %469 = dma.done.wait [#allocation4], 256  }
 0x24b   :  { %470 = vsyncadd [#allocation4], 4294967040 }
 0x24c   :  { %315 = vsyncpa [#allocation3], 1 }
 0x24d   :  { %316 = vsyncpa [#allocation4], 1 }

</bundles_post_ra>
